<compile_context>
chip_gen: v7x
topology: tpu7x:2x2x1
jax: 0.10.0
libtpu: 0.0.40
codegen_flags: <defaults>
</compile_context>

<pallas_src>
import functools

import jax
import jax.numpy as jnp
from jax import lax
from jax.experimental import pallas as pl
from jax.experimental.pallas import tpu as pltpu


# dot_general dimension numbers for A @ B^T (contract last dim of both operands).
_NT = (((1,), (1,)), ((), ()))


def _round_up(x, m):
    return ((x + m - 1) // m) * m


def _vmem_capacity_bytes():
    try:
        return int(pltpu.get_tpu_info().vmem_capacity_bytes)
    except Exception:
        return 64 << 20  # conservative (v7x); v5e / v6e have 128 MiB


def _vmem_estimate_bytes(row_tile, L2, D):
    """Rough VMEM working-set estimate for one grid step (lane/sublane padded)."""
    T8, L8 = _round_up(row_tile, 8), _round_up(L2, 8)
    Dp = _round_up(D, 128)
    Tp, L2p = _round_up(row_tile, 128), _round_up(L2, 128)
    est = 0
    est += 2 * T8 * Dp * 2          # v1 row tile, bf16, double-buffered
    est += 2 * L8 * Dp * 2          # v2 (resident per batch), bf16, double-buffered
    est += 2 * T8 * Dp * 4          # attended_v1 output tile, f32
    est += 2 * L8 * Dp * 4          # attended_v2 output block (accumulator), f32
    est += 2 * T8 * 128 * 4         # keep(v1) column block (lane-padded)
    est += 2 * L8 * 128 * 4         # keep(v2) column block (lane-padded)
    est += 2 * 8 * Tp * 4           # v1 row-mask block
    est += 2 * 8 * L2p * 4          # v2 row-mask block
    est += L8 * 128 * 4             # fused (m, l) online-softmax scratch
    est += 5 * T8 * L2p * 4         # live (TQ, L2) f32 score temporaries
    return est


def _choose_row_tile(L1, L2, D, capacity):
    """Largest L1 row tile whose estimated working set fits the VMEM budget."""
    budget = int(capacity * 0.55)
    cands = []
    if L1 <= 512:
        cands.append(L1)
    for t in (512, 256, 128, 64):
        if t < L1 and L1 % t == 0:
            cands.append(t)
    if not cands:
        cands = [L1]
    for t in cands:
        if _vmem_estimate_bytes(t, L2, D) <= budget:
            return t
    # TODO(synk): shapes too large even at the smallest tile need an L2 tiling
    # axis; fall back to the smallest candidate (still correct).
    return cands[-1]


def _vmem_limit_bytes(row_tile, L2, D, capacity):
    """Computed VMEM budget: estimate + headroom, capped under physical."""
    est = _vmem_estimate_bytes(row_tile, L2, D)
    limit = max(int(1.5 * est) + (8 << 20), 32 << 20)
    return min(limit, capacity - (8 << 20))


def _bidir_attn_kernel(dedup_scores, v1_ref, v2_ref, m1_row_ref, m2_row_ref,
                       keep1_ref, keep2_ref, av1_ref, av2_ref, ml_sc):
    # Per grid step (b, qi):
    #   v1_ref     : (1, TQ, D)  bf16  row tile of v1
    #   v2_ref     : (1, L2, D)  bf16  full v2 (resident per batch)
    #   m1_row_ref : (1, 1, TQ)  f32   v1_mask slice {0,1} (row / lane form)
    #   m2_row_ref : (1, 1, L2)  f32   v2_mask       {0,1} (row / lane form)
    #   keep1_ref  : (1, TQ, 1)  f32   1 - v1_mask slice (column / sublane form)
    #   keep2_ref  : (1, L2, 1)  f32   1 - v2_mask       (column / sublane form)
    #   av1_ref    : (1, TQ, D)        attended_v1 tile (written per step)
    #   av2_ref    : (1, L2, D)        attended_v2 block (accumulator across qi)
    #   ml_sc      : (L2, 2)     f32   lane 0 = running max, lane 1 = running sum
    qi = pl.program_id(1)
    last = pl.num_programs(1) - 1

    v1 = v1_ref[0]                               # (TQ, D) bf16
    v2 = v2_ref[0]                               # (L2, D) bf16
    fill = jnp.float32(-1e-07)                   # faithful to the reference module

    # Raw scores. One MXU matmul + an XLU transpose when D is MXU-sized;
    # otherwise two small matmuls (transpose of non-tile-aligned scores not worth it).
    scores = lax.dot_general(v1, v2, _NT, preferred_element_type=jnp.float32)   # (TQ, L2)
    if dedup_scores:
        scores_t = jnp.transpose(scores)                                        # (L2, TQ)
    else:
        scores_t = lax.dot_general(v2, v1, _NT, preferred_element_type=jnp.float32)

    # ---------------- attended_v1: softmax over L2 (lane axis) ----------------
    s2 = jnp.where(m2_row_ref[0] > 0.5, fill, scores)
    s2 = s2 - jnp.max(s2, axis=-1, keepdims=True)
    e2 = jnp.exp(s2)
    inv2 = pl.reciprocal(jnp.sum(e2, axis=-1, keepdims=True), approx=True)
    p12 = (e2 * inv2).astype(jnp.bfloat16)                                      # (TQ, L2)
    att1 = jnp.dot(p12, v2, preferred_element_type=jnp.float32)                 # (TQ, D)
    av1_ref[0] = (att1 * keep1_ref[0]).astype(av1_ref.dtype)

    # ---- attended_v2: online softmax over the tiled L1 axis, accumulated ----
    # ---- directly in the VMEM-resident output block (no f32 scratch).    ----
    @pl.when(qi == 0)
    def _():
        n = ml_sc.shape[0]
        ml_sc[:, 0:1] = jnp.full((n, 1), -jnp.inf, dtype=jnp.float32)
        ml_sc[:, 1:2] = jnp.zeros((n, 1), dtype=jnp.float32)
        av2_ref[0] = jnp.zeros(av2_ref.shape[1:], dtype=av2_ref.dtype)

    s1 = jnp.where(m1_row_ref[0] > 0.5, fill, scores_t)                         # (L2, TQ)
    m_prev = ml_sc[:, 0:1]
    l_prev = ml_sc[:, 1:2]
    m_new = jnp.maximum(m_prev, jnp.max(s1, axis=-1, keepdims=True))            # (L2, 1)
    alpha = jnp.exp(m_prev - m_new)
    p21 = jnp.exp(s1 - m_new)                                                   # (L2, TQ)
    ml_sc[:, 1:2] = alpha * l_prev + jnp.sum(p21, axis=-1, keepdims=True)
    ml_sc[:, 0:1] = m_new
    av2_ref[0] = (alpha * av2_ref[0].astype(jnp.float32)
                  + jnp.dot(p21.astype(jnp.bfloat16), v1,
                            preferred_element_type=jnp.float32)).astype(av2_ref.dtype)

    @pl.when(qi == last)
    def _():
        inv_l = pl.reciprocal(ml_sc[:, 1:2], approx=True)
        av2_ref[0] = (av2_ref[0].astype(jnp.float32) * inv_l
                      * keep2_ref[0]).astype(av2_ref.dtype)


def bidirectional_attention(v1, v1_mask, v2, v2_mask, *, row_tile=None):
    """v1: (B, L1, D) f32; v1_mask: (B, L1) bool; v2: (B, L2, D); v2_mask: (B, L2).

    Masks follow torch.masked_fill semantics: True == masked position.
    """
    B, L1, D = v1.shape
    _, L2, _ = v2.shape
    out_dt = jnp.promote_types(v1.dtype, v2.dtype)

    capacity = _vmem_capacity_bytes()
    if row_tile is None:
        row_tile = _choose_row_tile(L1, L2, D, capacity)
    assert L1 % row_tile == 0, "row_tile must divide L1"
    n_q = L1 // row_tile

    # bf16 matmul operands (MXU-native): halves input DMA and the resident v2
    # block; softmax math / accumulation stay f32 inside the kernel.
    v1_b = v1.astype(jnp.bfloat16)
    v2_b = v2.astype(jnp.bfloat16)

    f32 = jnp.float32
    m1f = v1_mask.astype(f32)
    m2f = v2_mask.astype(f32)
    # Row-form masks (softmax masking, broadcast along lanes) and "keep"
    # column-form masks (output zeroing along sublanes) are pre-shaped in the
    # wrapper so the kernel never relayouts mask data.
    m1_row = m1f.reshape(B, 1, L1)
    m2_row = m2f.reshape(B, 1, L2)
    keep1 = (1.0 - m1f).reshape(B, L1, 1)
    keep2 = (1.0 - m2f).reshape(B, L2, 1)

    # Score-matmul dedup (single MXU score matmul + XLU transpose) only in the
    # MXU-bound, tile-aligned regime.
    dedup = (D >= 128) and (row_tile % 128 == 0) and (L2 % 128 == 0)
    kernel = functools.partial(_bidir_attn_kernel, dedup)

    return pl.pallas_call(
        kernel,
        out_shape=(
            jax.ShapeDtypeStruct((B, L1, D), out_dt),
            jax.ShapeDtypeStruct((B, L2, D), out_dt),
        ),
        grid_spec=pltpu.PrefetchScalarGridSpec(
            num_scalar_prefetch=0,
            grid=(B, n_q),
            in_specs=[
                pl.BlockSpec((1, row_tile, D), lambda b, q: (b, q, 0)),  # v1 row tile (bf16)
                pl.BlockSpec((1, L2, D), lambda b, q: (b, 0, 0)),        # v2 resident (bf16)
                pl.BlockSpec((1, 1, row_tile), lambda b, q: (b, 0, q)),  # v1_mask row slice
                pl.BlockSpec((1, 1, L2), lambda b, q: (b, 0, 0)),        # v2_mask row
                pl.BlockSpec((1, row_tile, 1), lambda b, q: (b, q, 0)),  # keep(v1) col slice
                pl.BlockSpec((1, L2, 1), lambda b, q: (b, 0, 0)),        # keep(v2) col
            ],
            out_specs=[
                pl.BlockSpec((1, row_tile, D), lambda b, q: (b, q, 0)),  # attended_v1
                pl.BlockSpec((1, L2, D), lambda b, q: (b, 0, 0)),        # attended_v2 (acc over q)
            ],
            scratch_shapes=[
                pltpu.VMEM((L2, 2), jnp.float32),   # fused running max / running sum
            ],
        ),
        compiler_params=pltpu.CompilerParams(
            dimension_semantics=("parallel", "arbitrary"),
            vmem_limit_bytes=_vmem_limit_bytes(row_tile, L2, D, capacity),
        ),
    )(v1_b, v2_b, m1_row, m2_row, keep1, keep2)


def _reference(v1, v1_mask, v2, v2_mask, matmul_dtype=jnp.float32):
    """Pure-JAX mirror of the PyTorch forward.

    With matmul_dtype=bfloat16 it rounds matmul operands the same way the
    kernel does (tight numerical comparison); with float32 it is the exact
    f32 mirror of the module.
    """
    f32 = jnp.float32
    a = v1.astype(matmul_dtype)
    b = v2.astype(matmul_dtype)
    sim = jnp.einsum("bld,bmd->blm", a, b, preferred_element_type=f32)
    fill = f32(-1e-07)
    s1 = jnp.where(v1_mask[:, :, None], fill, sim)
    s2 = jnp.where(v2_mask[:, None, :], fill, sim)
    v2_v1_attn = jax.nn.softmax(s1, axis=1).astype(matmul_dtype)
    v1_v2_attn = jax.nn.softmax(s2, axis=2).astype(matmul_dtype)
    attended_v1 = jnp.einsum("blm,bmd->bld", v1_v2_attn, b, preferred_element_type=f32)
    attended_v2 = jnp.einsum("blm,bld->bmd", v2_v1_attn, a, preferred_element_type=f32)
    attended_v1 = jnp.where(v1_mask[:, :, None], 0.0, attended_v1)
    attended_v2 = jnp.where(v2_mask[:, :, None], 0.0, attended_v2)
    return attended_v1, attended_v2


if __name__ == "__main__":
    def _check(B, L1, L2, D, row_tile=None, check_f32=True):
        key = jax.random.PRNGKey(0)
        k1, k2, k3, k4 = jax.random.split(key, 4)
        v1 = jax.random.normal(k1, (B, L1, D), dtype=jnp.float32)
        v2 = jax.random.normal(k2, (B, L2, D), dtype=jnp.float32)
        # True == padding position (gets masked), matching torch.masked_fill.
        v1_mask = jax.random.bernoulli(k3, p=0.3, shape=(B, L1))
        v2_mask = jax.random.bernoulli(k4, p=0.3, shape=(B, L2))

        out1, out2 = bidirectional_attention(v1, v1_mask, v2, v2_mask,
                                             row_tile=row_tile)
        out1 = jax.block_until_ready(out1)
        out2 = jax.block_until_ready(out2)
        assert out1.shape == (B, L1, D) and out2.shape == (B, L2, D)

        # Tight check against a reference with the same bf16 matmul rounding.
        r1, r2 = _reference(v1, v1_mask, v2, v2_mask, matmul_dtype=jnp.bfloat16)
        assert jnp.allclose(out1, r1, rtol=2e-2, atol=2e-2), \
            f"attended_v1 mismatch, max diff {jnp.max(jnp.abs(out1 - r1))}"
        assert jnp.allclose(out2, r2, rtol=2e-2, atol=2e-2), \
            f"attended_v2 mismatch, max diff {jnp.max(jnp.abs(out2 - r2))}"

        if check_f32:
            # Loose check against the exact f32 mirror of the PyTorch module
            # (bounds the bf16 matmul noise).
            f1, f2 = _reference(v1, v1_mask, v2, v2_mask)
            assert jnp.allclose(out1, f1, rtol=1e-1, atol=1e-1)
            assert jnp.allclose(out2, f2, rtol=1e-1, atol=1e-1)

    # Small shapes consistent with the module (single row tile, two-matmul path).
    _check(B=2, L1=8, L2=16, D=32)
    # Exercises L1 row tiling, the av2 output-block accumulator over q, and the
    # single-score-matmul + XLU-transpose dedup path (D = 128).
    _check(B=2, L1=256, L2=128, D=128, row_tile=128, check_f32=False)

    print("KERNEL_OK")
</pallas_src>

<mosaic_0001>
module attributes {stable_mosaic.version = 11 : i64} {
  func.func @_bidir_attn_kernel(%arg0: i32, %arg1: i32, %arg2: memref<1x8x32xbf16, #tpu.memory_space<vmem>>, %arg3: memref<1x16x32xbf16, #tpu.memory_space<vmem>>, %arg4: memref<1x1x8xf32, #tpu.memory_space<vmem>>, %arg5: memref<1x1x16xf32, #tpu.memory_space<vmem>>, %arg6: memref<1x8x1xf32, #tpu.memory_space<vmem>>, %arg7: memref<1x16x1xf32, #tpu.memory_space<vmem>>, %arg8: memref<1x8x32xf32, #tpu.memory_space<vmem>>, %arg9: memref<1x16x32xf32, #tpu.memory_space<vmem>>, %arg10: memref<16x2xf32, #tpu.memory_space<vmem>>) attributes {dimension_semantics = [#tpu.dimension_semantics<parallel>, #tpu.dimension_semantics<arbitrary>], iteration_bounds = array<i64: 2, 1>, scalar_prefetch = 0 : i64, scratch_operands = 1 : i64, tpu.core_type = #tpu.core_type<tc>, window_params = [{transform_indices = @transform_0, window_bounds = array<i64: 1, 8, 32>}, {transform_indices = @transform_1, window_bounds = array<i64: 1, 16, 32>}, {transform_indices = @transform_2, window_bounds = array<i64: 1, 1, 8>}, {transform_indices = @transform_3, window_bounds = array<i64: 1, 1, 16>}, {transform_indices = @transform_4, window_bounds = array<i64: 1, 8, 1>}, {transform_indices = @transform_5, window_bounds = array<i64: 1, 16, 1>}, {transform_indices = @transform_6, window_bounds = array<i64: 1, 8, 32>}, {transform_indices = @transform_7, window_bounds = array<i64: 1, 16, 32>}]} {
    %c0 = arith.constant 0 : index
    %c0_0 = arith.constant 0 : index
    %c0_1 = arith.constant 0 : index
    %0 = vector.load %arg2[%c0, %c0_0, %c0_1] : memref<1x8x32xbf16, #tpu.memory_space<vmem>>, vector<1x8x32xbf16>
    %1 = vector.shape_cast %0 : vector<1x8x32xbf16> to vector<8x32xbf16>
    %c0_2 = arith.constant 0 : index
    %c0_3 = arith.constant 0 : index
    %c0_4 = arith.constant 0 : index
    %2 = vector.load %arg3[%c0_2, %c0_3, %c0_4] : memref<1x16x32xbf16, #tpu.memory_space<vmem>>, vector<1x16x32xbf16>
    %3 = vector.shape_cast %2 : vector<1x16x32xbf16> to vector<16x32xbf16>
    %cst = arith.constant dense<0.000000e+00> : vector<8x16xf32>
    %4 = tpu.matmul %1, %3, %cst {dimension_numbers = #tpu.dot_dimension_numbers<[1], [1], [0], [0], [0, 0, 1, 0], [], []>} : vector<8x32xbf16>, vector<16x32xbf16>, vector<8x16xf32> -> vector<8x16xf32>
    %cst_5 = arith.constant dense<0.000000e+00> : vector<16x8xf32>
    %5 = tpu.matmul %3, %1, %cst_5 {dimension_numbers = #tpu.dot_dimension_numbers<[1], [1], [0], [0], [0, 0, 1, 0], [], []>} : vector<16x32xbf16>, vector<8x32xbf16>, vector<16x8xf32> -> vector<16x8xf32>
    %c0_6 = arith.constant 0 : index
    %c0_7 = arith.constant 0 : index
    %c0_8 = arith.constant 0 : index
    %6 = vector.load %arg5[%c0_6, %c0_7, %c0_8] : memref<1x1x16xf32, #tpu.memory_space<vmem>>, vector<1x1x16xf32>
    %7 = vector.shape_cast %6 : vector<1x1x16xf32> to vector<1x16xf32>
    %cst_9 = arith.constant 5.000000e-01 : f32
    %8 = vector.broadcast %cst_9 : f32 to vector<1x16xf32>
    %9 = arith.cmpf ogt, %7, %8 : vector<1x16xf32>
    %cst_10 = arith.constant -1.000000e-07 : f32
    %10 = vector.shape_cast %9 : vector<1x16xi1> to vector<1x16xi1>
    %11 = vector.broadcast %10 : vector<1x16xi1> to vector<8x16xi1>
    %12 = vector.broadcast %cst_10 : f32 to vector<8x16xf32>
    %13 = arith.select %11, %12, %4 : vector<8x16xi1>, vector<8x16xf32>
    %cst_11 = arith.constant dense<0xFF800000> : vector<8xf32>
    %14 = vector.multi_reduction <maximumf>, %13, %cst_11 [1] : vector<8x16xf32> to vector<8xf32>
    %15 = vector.shape_cast %14 : vector<8xf32> to vector<8x1xf32>
    %16 = vector.broadcast %15 : vector<8x1xf32> to vector<8x16xf32>
    %17 = arith.subf %13, %16 : vector<8x16xf32>
    %18 = math.exp %17 : vector<8x16xf32>
    %cst_12 = arith.constant dense<0.000000e+00> : vector<8xf32>
    %19 = vector.multi_reduction <add>, %18, %cst_12 [1] : vector<8x16xf32> to vector<8xf32>
    %20 = vector.shape_cast %19 : vector<8xf32> to vector<8x1xf32>
    %21 = tpu.reciprocal %20 {approx = true} : vector<8x1xf32> -> vector<8x1xf32>
    %22 = vector.broadcast %21 : vector<8x1xf32> to vector<8x16xf32>
    %23 = arith.mulf %18, %22 : vector<8x16xf32>
    %24 = arith.truncf %23 : vector<8x16xf32> to vector<8x16xbf16>
    %cst_13 = arith.constant dense<0.000000e+00> : vector<8x32xf32>
    %25 = tpu.matmul %24, %3, %cst_13 {dimension_numbers = #tpu.dot_dimension_numbers<[1], [0], [0], [1], [0, 0, 1, 1], [], []>} : vector<8x16xbf16>, vector<16x32xbf16>, vector<8x32xf32> -> vector<8x32xf32>
    %c0_14 = arith.constant 0 : index
    %c0_15 = arith.constant 0 : index
    %c0_16 = arith.constant 0 : index
    %26 = vector.load %arg6[%c0_14, %c0_15, %c0_16] : memref<1x8x1xf32, #tpu.memory_space<vmem>>, vector<1x8x1xf32>
    %27 = vector.shape_cast %26 : vector<1x8x1xf32> to vector<8x1xf32>
    %28 = vector.broadcast %27 : vector<8x1xf32> to vector<8x32xf32>
    %29 = arith.mulf %25, %28 : vector<8x32xf32>
    %c0_17 = arith.constant 0 : index
    %c0_18 = arith.constant 0 : index
    %c0_19 = arith.constant 0 : index
    %30 = vector.load %arg8[%c0_17, %c0_18, %c0_19] : memref<1x8x32xf32, #tpu.memory_space<vmem>>, vector<1x8x32xf32>
    %31 = vector.shape_cast %30 : vector<1x8x32xf32> to vector<8x32xf32>
    %32 = vector.shape_cast %29 : vector<8x32xf32> to vector<1x8x32xf32>
    tpu.vector_store %arg8[%c0_17, %c0_18, %c0_19], %32 {strides = array<i32>} : memref<1x8x32xf32, #tpu.memory_space<vmem>>, vector<1x8x32xf32>,
    %c0_i32 = arith.constant 0 : i32
    %33 = arith.cmpi eq, %arg1, %c0_i32 : i32
    %34 = arith.extui %33 : i1 to i32
    %c0_i32_20 = arith.constant 0 : i32
    %35 = arith.cmpi ne, %34, %c0_i32_20 : i32
    scf.if %35 {
      %cst_44 = arith.constant 0xFF800000 : f32
      %73 = vector.broadcast %cst_44 : f32 to vector<16x1xf32>
      %c0_45 = arith.constant 0 : index
      %c0_46 = arith.constant 0 : index
      %74 = vector.load %arg10[%c0_45, %c0_46] : memref<16x2xf32, #tpu.memory_space<vmem>>, vector<16x1xf32>
      tpu.vector_store %arg10[%c0_45, %c0_46], %73 {strides = array<i32>} : memref<16x2xf32, #tpu.memory_space<vmem>>, vector<16x1xf32>,
      %cst_47 = arith.constant 0.000000e+00 : f32
      %75 = vector.broadcast %cst_47 : f32 to vector<16x1xf32>
      %c0_48 = arith.constant 0 : index
      %c1_49 = arith.constant 1 : index
      %76 = vector.load %arg10[%c0_48, %c1_49] : memref<16x2xf32, #tpu.memory_space<vmem>>, vector<16x1xf32>
      tpu.vector_store %arg10[%c0_48, %c1_49], %75 {strides = array<i32>} : memref<16x2xf32, #tpu.memory_space<vmem>>, vector<16x1xf32>,
      %cst_50 = arith.constant 0.000000e+00 : f32
      %77 = vector.broadcast %cst_50 : f32 to vector<16x32xf32>
      %c0_51 = arith.constant 0 : index
      %c0_52 = arith.constant 0 : index
      %c0_53 = arith.constant 0 : index
      %78 = vector.load %arg9[%c0_51, %c0_52, %c0_53] : memref<1x16x32xf32, #tpu.memory_space<vmem>>, vector<1x16x32xf32>
      %79 = vector.shape_cast %78 : vector<1x16x32xf32> to vector<16x32xf32>
      %80 = vector.shape_cast %77 : vector<16x32xf32> to vector<1x16x32xf32>
      tpu.vector_store %arg9[%c0_51, %c0_52, %c0_53], %80 {strides = array<i32>} : memref<1x16x32xf32, #tpu.memory_space<vmem>>, vector<1x16x32xf32>,
    } else {
    }
    %c0_21 = arith.constant 0 : index
    %c0_22 = arith.constant 0 : index
    %c0_23 = arith.constant 0 : index
    %36 = vector.load %arg4[%c0_21, %c0_22, %c0_23] : memref<1x1x8xf32, #tpu.memory_space<vmem>>, vector<1x1x8xf32>
    %37 = vector.shape_cast %36 : vector<1x1x8xf32> to vector<1x8xf32>
    %cst_24 = arith.constant 5.000000e-01 : f32
    %38 = vector.broadcast %cst_24 : f32 to vector<1x8xf32>
    %39 = arith.cmpf ogt, %37, %38 : vector<1x8xf32>
    %cst_25 = arith.constant -1.000000e-07 : f32
    %40 = vector.shape_cast %39 : vector<1x8xi1> to vector<1x8xi1>
    %41 = vector.broadcast %40 : vector<1x8xi1> to vector<16x8xi1>
    %42 = vector.broadcast %cst_25 : f32 to vector<16x8xf32>
    %43 = arith.select %41, %42, %5 : vector<16x8xi1>, vector<16x8xf32>
    %c0_26 = arith.constant 0 : index
    %c0_27 = arith.constant 0 : index
    %44 = vector.load %arg10[%c0_26, %c0_27] : memref<16x2xf32, #tpu.memory_space<vmem>>, vector<16x1xf32>
    %c0_28 = arith.constant 0 : index
    %c1 = arith.constant 1 : index
    %45 = vector.load %arg10[%c0_28, %c1] : memref<16x2xf32, #tpu.memory_space<vmem>>, vector<16x1xf32>
    %cst_29 = arith.constant dense<0xFF800000> : vector<16xf32>
    %46 = vector.multi_reduction <maximumf>, %43, %cst_29 [1] : vector<16x8xf32> to vector<16xf32>
    %47 = vector.shape_cast %46 : vector<16xf32> to vector<16x1xf32>
    %48 = arith.maximumf %44, %47 : vector<16x1xf32>
    %49 = arith.subf %44, %48 : vector<16x1xf32>
    %50 = math.exp %49 : vector<16x1xf32>
    %51 = vector.broadcast %48 : vector<16x1xf32> to vector<16x8xf32>
    %52 = arith.subf %43, %51 : vector<16x8xf32>
    %53 = math.exp %52 : vector<16x8xf32>
    %54 = arith.mulf %50, %45 : vector<16x1xf32>
    %cst_30 = arith.constant dense<0.000000e+00> : vector<16xf32>
    %55 = vector.multi_reduction <add>, %53, %cst_30 [1] : vector<16x8xf32> to vector<16xf32>
    %56 = vector.shape_cast %55 : vector<16xf32> to vector<16x1xf32>
    %57 = arith.addf %54, %56 : vector<16x1xf32>
    %c0_31 = arith.constant 0 : index
    %c1_32 = arith.constant 1 : index
    %58 = vector.load %arg10[%c0_31, %c1_32] : memref<16x2xf32, #tpu.memory_space<vmem>>, vector<16x1xf32>
    tpu.vector_store %arg10[%c0_31, %c1_32], %57 {strides = array<i32>} : memref<16x2xf32, #tpu.memory_space<vmem>>, vector<16x1xf32>,
    %c0_33 = arith.constant 0 : index
    %c0_34 = arith.constant 0 : index
    %59 = vector.load %arg10[%c0_33, %c0_34] : memref<16x2xf32, #tpu.memory_space<vmem>>, vector<16x1xf32>
    tpu.vector_store %arg10[%c0_33, %c0_34], %48 {strides = array<i32>} : memref<16x2xf32, #tpu.memory_space<vmem>>, vector<16x1xf32>,
    %c0_35 = arith.constant 0 : index
    %c0_36 = arith.constant 0 : index
    %c0_37 = arith.constant 0 : index
    %60 = vector.load %arg9[%c0_35, %c0_36, %c0_37] : memref<1x16x32xf32, #tpu.memory_space<vmem>>, vector<1x16x32xf32>
    %61 = vector.shape_cast %60 : vector<1x16x32xf32> to vector<16x32xf32>
    %62 = vector.broadcast %50 : vector<16x1xf32> to vector<16x32xf32>
    %63 = arith.mulf %62, %61 : vector<16x32xf32>
    %64 = arith.truncf %53 : vector<16x8xf32> to vector<16x8xbf16>
    %cst_38 = arith.constant dense<0.000000e+00> : vector<16x32xf32>
    %65 = tpu.matmul %64, %1, %cst_38 {dimension_numbers = #tpu.dot_dimension_numbers<[1], [0], [0], [1], [0, 0, 1, 1], [], []>} : vector<16x8xbf16>, vector<8x32xbf16>, vector<16x32xf32> -> vector<16x32xf32>
    %66 = arith.addf %63, %65 : vector<16x32xf32>
    %c0_39 = arith.constant 0 : index
    %c0_40 = arith.constant 0 : index
    %c0_41 = arith.constant 0 : index
    %67 = vector.load %arg9[%c0_39, %c0_40, %c0_41] : memref<1x16x32xf32, #tpu.memory_space<vmem>>, vector<1x16x32xf32>
    %68 = vector.shape_cast %67 : vector<1x16x32xf32> to vector<16x32xf32>
    %69 = vector.shape_cast %66 : vector<16x32xf32> to vector<1x16x32xf32>
    tpu.vector_store %arg9[%c0_39, %c0_40, %c0_41], %69 {strides = array<i32>} : memref<1x16x32xf32, #tpu.memory_space<vmem>>, vector<1x16x32xf32>,
    %c0_i32_42 = arith.constant 0 : i32
    %70 = arith.cmpi eq, %arg1, %c0_i32_42 : i32
    %71 = arith.extui %70 : i1 to i32
    %c0_i32_43 = arith.constant 0 : i32
    %72 = arith.cmpi ne, %71, %c0_i32_43 : i32
    scf.if %72 {
      %c0_44 = arith.constant 0 : index
      %c1_45 = arith.constant 1 : index
      %73 = vector.load %arg10[%c0_44, %c1_45] : memref<16x2xf32, #tpu.memory_space<vmem>>, vector<16x1xf32>
      %74 = tpu.reciprocal %73 {approx = true} : vector<16x1xf32> -> vector<16x1xf32>
      %c0_46 = arith.constant 0 : index
      %c0_47 = arith.constant 0 : index
      %c0_48 = arith.constant 0 : index
      %75 = vector.load %arg9[%c0_46, %c0_47, %c0_48] : memref<1x16x32xf32, #tpu.memory_space<vmem>>, vector<1x16x32xf32>
      %76 = vector.shape_cast %75 : vector<1x16x32xf32> to vector<16x32xf32>
      %77 = vector.broadcast %74 : vector<16x1xf32> to vector<16x32xf32>
      %78 = arith.mulf %76, %77 : vector<16x32xf32>
      %c0_49 = arith.constant 0 : index
      %c0_50 = arith.constant 0 : index
      %c0_51 = arith.constant 0 : index
      %79 = vector.load %arg7[%c0_49, %c0_50, %c0_51] : memref<1x16x1xf32, #tpu.memory_space<vmem>>, vector<1x16x1xf32>
      %80 = vector.shape_cast %79 : vector<1x16x1xf32> to vector<16x1xf32>
      %81 = vector.broadcast %80 : vector<16x1xf32> to vector<16x32xf32>
      %82 = arith.mulf %78, %81 : vector<16x32xf32>
      %c0_52 = arith.constant 0 : index
      %c0_53 = arith.constant 0 : index
      %c0_54 = arith.constant 0 : index
      %83 = vector.load %arg9[%c0_52, %c0_53, %c0_54] : memref<1x16x32xf32, #tpu.memory_space<vmem>>, vector<1x16x32xf32>
      %84 = vector.shape_cast %83 : vector<1x16x32xf32> to vector<16x32xf32>
      %85 = vector.shape_cast %82 : vector<16x32xf32> to vector<1x16x32xf32>
      tpu.vector_store %arg9[%c0_52, %c0_53, %c0_54], %85 {strides = array<i32>} : memref<1x16x32xf32, #tpu.memory_space<vmem>>, vector<1x16x32xf32>,
    } else {
    }
    return
  }
  func.func @transform_0(%arg0: i32, %arg1: i32) -> (i32, i32, i32) {
    %c0_i32 = arith.constant 0 : i32
    %c0_i32_0 = arith.constant 0 : i32
    return %arg0, %arg1, %c0_i32 : i32, i32, i32
  }
  func.func @transform_1(%arg0: i32, %arg1: i32) -> (i32, i32, i32) {
    %c0_i32 = arith.constant 0 : i32
    %c0_i32_0 = arith.constant 0 : i32
    %c0_i32_1 = arith.constant 0 : i32
    return %arg0, %c0_i32, %c0_i32_0 : i32, i32, i32
  }
  func.func @transform_2(%arg0: i32, %arg1: i32) -> (i32, i32, i32) {
    %c0_i32 = arith.constant 0 : i32
    %c0_i32_0 = arith.constant 0 : i32
    return %arg0, %c0_i32, %arg1 : i32, i32, i32
  }
  func.func @transform_3(%arg0: i32, %arg1: i32) -> (i32, i32, i32) {
    %c0_i32 = arith.constant 0 : i32
    %c0_i32_0 = arith.constant 0 : i32
    %c0_i32_1 = arith.constant 0 : i32
    return %arg0, %c0_i32, %c0_i32_0 : i32, i32, i32
  }
  func.func @transform_4(%arg0: i32, %arg1: i32) -> (i32, i32, i32) {
    %c0_i32 = arith.constant 0 : i32
    %c0_i32_0 = arith.constant 0 : i32
    return %arg0, %arg1, %c0_i32 : i32, i32, i32
  }
  func.func @transform_5(%arg0: i32, %arg1: i32) -> (i32, i32, i32) {
    %c0_i32 = arith.constant 0 : i32
    %c0_i32_0 = arith.constant 0 : i32
    %c0_i32_1 = arith.constant 0 : i32
    return %arg0, %c0_i32, %c0_i32_0 : i32, i32, i32
  }
  func.func @transform_6(%arg0: i32, %arg1: i32) -> (i32, i32, i32) {
    %c0_i32 = arith.constant 0 : i32
    %c0_i32_0 = arith.constant 0 : i32
    return %arg0, %arg1, %c0_i32 : i32, i32, i32
  }
  func.func @transform_7(%arg0: i32, %arg1: i32) -> (i32, i32, i32) {
    %c0_i32 = arith.constant 0 : i32
    %c0_i32_0 = arith.constant 0 : i32
    %c0_i32_1 = arith.constant 0 : i32
    return %arg0, %c0_i32, %c0_i32_0 : i32, i32, i32
  }
}

</mosaic_0001>

<bundles_post_ra>
// kernel: tpu_custom_call.1
= control target key start
LH: loop header
LB: loop body
LE: loop exit
PB: predicated region body
PF: predicated region fallthrough
CT: control target
= control target key end

     0   :  { %13 = vsyncpa [#allocation4], 0  ;;  %s1539_s0 = inlined_call_operand.vmem [shape: bf16[2,8,32], index: 0, kind: input, shape index: {}]   ;;  %s1540_s1 = inlined_call_operand.vmem [shape: bf16[2,16,32], index: 1, kind: input, shape index: {}]   ;;  %s1541_s2 = inlined_call_operand.vmem [shape: f32[2,1,8], index: 2, kind: input, shape index: {}]   ;;  %s1542_s3 = inlined_call_operand.vmem [shape: f32[2,1,16], index: 3, kind: input, shape index: {}]   ;;  %s1543_s4 = inlined_call_operand.vmem [shape: f32[2,8,1], index: 4, kind: input, shape index: {}]   ;;  %s1544_s5 = inlined_call_operand.vmem [shape: f32[2,16,1], index: 5, kind: input, shape index: {}]   ;;  %s1545_s6 = inlined_call_operand.hbm [shape: f32[2,8,32], index: 6, kind: output, shape index: {0}]   ;;  %s1546_s7 = inlined_call_operand.hbm [shape: f32[2,16,32], index: 7, kind: output, shape index: {1}]  }
   0x1   :  { %15 = vsyncpa [#allocation4 + $0x1], 0 }
   0x2   :  { %16 = vsyncpa [#allocation6], 0 }
   0x3   :  { %18 = vsyncpa [#allocation6 + $0x1], 0  ;;  %s1290_s24 = smov 0   ;;  %s1292_s25 = smov 0  }
   0x4   :  { %s1294_s26 = smov 0   ;;  %s1296_s27 = smov 0  }
   0x5   :  { %s1298_s28 = smov 0   ;;  %s1300_s29 = smov 0  }
   0x6 LB: > { %s977_s30 = sadd.s32 4294967295, %s1237_s29   ;;  %s978_s8 = sadd.s32 4294967294, %s1237_s29   ;;  %s1237_s29 = sphi %s1300_s29, %s24_s29   ;;  %s1233_s28 = sphi %s1298_s28, %s1553_s28   ;;  %s1229_s27 = sphi %s1296_s27, %s1552_s27   ;;  %s1225_s26 = sphi %s1294_s26, %s1551_s26   ;;  %s1221_s25 = sphi %s1292_s25, %s1550_s25   ;;  %s1217_s24 = sphi %s1290_s24, %s1549_s24  }
   0x7   : > { %s36_s9 = sadd.s32 1, %s1233_s28  ;;  %s207_s10 = sadd.s32 1, %s1225_s26 }
   0x8   : > { %p38_p0 = scmp.ge.s32.totalorder %s36_s9, 2  ;;  %p217_p1 = scmp.ne.s32.totalorder %s1225_s26, %s1221_s25 }
   0x9   : > { %p218_p2 = scmp.eq.s32.totalorder %s977_s30, 1  ;;  %p223_p3 = scmp.ne.s32.totalorder %s1221_s25, %s1217_s24 }
   0xa   : > { %s1555_s9 = smov (%p38_p0, %s36_s9), 0  ;;  %p224_p5 = scmp.eq.s32.totalorder %s978_s8, 1 }
   0xb   : > { %p1330_p4 = por %p218_p2, %p217_p1  ;;  %s202_s12 = ssub.s32 %s1233_s28, %s1555_s9 }
   0xc   : > { %p981_p6 = scmp.ge.s32.totalorder %s1237_s29, 1  ;;  %p205_p7 = scmp.eq.s32.totalorder %s202_s12, 0 }
   0xd   : > { %p1337_p8 = por %p224_p5, %p223_p3  ;;  %p319_p9 = scmp.lt.s32.totalorder %s1237_s29, 3 }
   0xe   : > { %s1343_s14 = scalar_select %p205_p7, %s1225_s26, %s207_s10  }
   0xf   : > { %p320_p10 = pnand %p981_p6, %p319_p9 }
  0x10   : > { %p384_p11 = scmp.lt.s32.totalorder (!%p320_p10), %s1229_s27, 1  ;;  %v1239_v0 = vmov (!%p320_p10), 0.0   ;;  %vm1240_vm0 = vmmov (!%p320_p10), 0   ;;  %vm426_vm1 = vcmask (!%p320_p10), 261120   ;;  %v1241_v5 = vmov (!%p320_p10), 0   ;;  %s1243_s19 = smov (!%p320_p10), 127  }
  0x11   : > { %323 = sbr.rel (%p320_p10) target bundleno = 977 (0x3d1), region = 44  ;;  %1019 = vmatprep.subr.bf16.mxu1 (!%p320_p10), %v1239_v0  ;;  %1013 = vmatprep.subr.bf16.mxu0 (!%p320_p10), %v1239_v0  ;;  %v517_v6 = vlaneseq (!%p320_p10)  ;;  %vm523_vm6 = vcmask (!%p320_p10), 130048   ;;  %vm612_vm7 = vcmask (!%p320_p10), 64512   ;;  %vm592_vm8 = vcmask (!%p320_p10), 7168   ;;  %s1244_s30 = smov (!%p320_p10), 1  }
  0x12   : > { %1021 = vmatprep.mubr.msk.bf16.mxu1 (!%p320_p10), %vm1240_vm0, %v1239_v0  ;;  %1015 = vmatprep.mubr.msk.bf16.mxu0 (!%p320_p10), %vm1240_vm0, %v1239_v0  ;;  %v1242_v29 = vmov (!%p320_p10), -inf   ;;  %vm595_vm9 = vcmask (!%p320_p10), 15368   ;;  %vm693_vm10 = vcmask (!%p320_p10), 1043456  }
  0x13   : > { %1107 = vset.pattern.permute.xlu0 (!%p320_p10), %v1241_v5  ;;  %1106 = vset.pattern.permute.xlu1 (!%p320_p10), %v1241_v5  ;;  %v518_v9 = vshrl.u32 (!%p320_p10), %v517_v6, 7  ;;  %594 = vst.msk [vmem:[#allocation2 + $0x8] sm:$0xff] (!%p320_p10), %vm592_vm8, %v1242_v29  ;;  %593 = vst.msk [vmem:[#allocation2] sm:$0xff] (!%p320_p10), %vm592_vm8, %v1242_v29 }
  0x14   : > { %597 = vst.msk [vmem:[#allocation2 + $0x8] sm:$0xff] (!%p320_p10), %vm595_vm9, %v1239_v0  ;;  %596 = vst.msk [vmem:[#allocation2] sm:$0xff] (!%p320_p10), %vm595_vm9, %v1239_v0 }
  0x15   : > { %v519_v10 = vsub.s32 (!%p320_p10), 0, %v518_v9 }
  0x18   : > { %s1349_s15 = scalar_select %p384_p11, %s1229_s27, 1 }
  0x1a   : > { %s984_s16 = sshll.u32 %s1349_s15, 2  ;;  %s1002_s17 = sshll.u32 %s1349_s15, 3 }
  0x1b   : > { %s390_s20 = scalar_lea.vmem %s1539_s0, %s984_s16  ;;  %s395_s23 = scalar_lea.vmem %s1540_s1, %s1002_s17  ;;  %v611_v30 = vld [vmem:[#allocation2 + $0x8] sm:$0xff]  ;;  %v610_v34 = vld [vmem:[#allocation2] sm:$0xff] }
  0x1c   : > { %v1365_v1 = vld [vmem:[%s390_s20] sm:$0xf]  ;;  %s401_s10 = scalar_lea.vmem %s1541_s2, %s1349_s15  ;;  %s404_s18 = scalar_lea.vmem %s1542_s3, %s1349_s15 }
  0x1d   : > { %v428_v2 = vsel %vm426_vm1, %v1365_v1, 0  ;;  %v1110_v3 = vld [vmem:[%s395_s23] sm:$0xff]   ;;  %v694_v37 = vsel %vm693_vm10, %v1365_v1, 0  ;;  %s1415_s20 = sand.u32 1, %s1221_s25   ;;  %s1003_s23 = sshll.u32 %s1349_s15, 4 }
  0x1e   : > { %1020 = vmatpush3.bf16.xpose.msra.mxu1 %v428_v2  ;;  %v431_v4 = vsel %vm426_vm1, %v1110_v3, 0  ;;  %v600_v7 = vld [vmem:[%s401_s10] sm:$0x1]  ;;  %s983_s21 = sshll.u32 %s1415_s20, 4  ;;  %s1430_s12 = scalar_lea.vmem %s1544_s5, %s1003_s23 }
  0x1f   : > { %1031 = vmatprep.subr.bf16.mxu1 %v1239_v0  ;;  %1014 = vmatpush3.bf16.xpose.msra.mxu0 %v431_v4  ;;  %v514_v8 = vld [vmem:[%s404_s18] sm:$0x1]  ;;  %vm601_vm2 = vcmp.gt.f32.partialorder %v600_v7, 0.5  ;;  %s1418_s22 = scalar_lea.vmem [#allocation5], %s983_s21  ;;  %s982_s15 = sshll.u32 %s1415_s20, 3 }
  0x20   : > { %1025 = vmatprep.subr.bf16.mxu0 %v1239_v0  ;;  %vm515_vm3 = vcmp.gt.f32.partialorder %v514_v8, 0.5  ;;  %v602_v11 = vsel %vm601_vm2, 1, %v1241_v5  ;;  %598 = vst.msk [vmem:[%s1418_s22] sm:$0xff] %vm426_vm1, %v1239_v0  ;;  %599 = vst.msk [vmem:[%s1418_s22 + $0x8] sm:$0xff] %vm426_vm1, %v1239_v0  ;;  %v762_v9 = vld [vmem:[%s1430_s12] sm:$0xff]  ;;  %s997_s21 = sshll.u32 %s1229_s27, 7 }
  0x21   : > { %v516_v12 = vsel %vm515_vm3, 1, %v1241_v5  ;;  %v606_v13 = vrot.slane %v602_v11, %v519_v10  ;;  %s1458_s10 = scalar_lea.hbm %s1545_s6, %s997_s21  ;;  %s779_s16 = scalar_lea.sflag [#allocation4], %s1415_s20 }
  0x22   : > { %v520_v14 = vrot.slane %v516_v12, %v519_v10  ;;  %v1245_v10 = vmov 1  }
  0x23   : > { %vm607_vm4 = vcmp.eq.s32.totalorder %v606_v13, 1 }
  0x24   : > { %vm521_vm5 = vcmp.eq.s32.totalorder %v520_v14, 1 }
  0x25   : > { %1022 = vmatmul.mubr.msk.bf16.vlgmr.msra.gmra.mrb[0].mxu1 %vm426_vm1, %v1110_v3 }
  0x26   : > { %1033 = vmatprep.mubr.msk.bf16.mxu1 %vm1240_vm0, %v1239_v0  ;;  %1016 = vmatmul.mubr.msk.bf16.vlgmr.msra.gmra.mrb[0].mxu0 %vm426_vm1, %v1365_v1 }
  0x27   : > { %1026 = vmatpush3.bf16.msra.mxu0 %v1110_v3  ;;  %1027 = vmatprep.mubr.msk.bf16.mxu0 %vm1240_vm0, %v1239_v0 }
  0x28   : > { %1032 = vmatpush3.bf16.msra.mxu1 %v694_v37 }
  0xf8   : > { %v507_v15 = vpop.f32.mrb[0].mxu1 }
  0xf9   : > { %v1023_v16 = vpop.f32.mrb[1].mxu1  ;;  %v467_v17 = vpop.f32.mrb[0].mxu0  ;;  %v608_v26 = vsel %vm607_vm4, -1e-07, %v507_v15 }
  0xfa   : > { %v510_v18 = vpop.f32.mrb[2].mxu1  ;;  %v522_v19 = vsel %vm521_vm5, -1e-07, %v467_v17  ;;  %v1017_v21 = vpop.f32.mrb[1].mxu0  ;;  %v613_v28 = vsel %vm612_vm7, %v608_v26, -inf }
  0xfb   : > { %v609_v20 = vsel %vm607_vm4, -1e-07, %v510_v18  ;;  %v1024_v22 = vpop.f32.mrb[3].mxu1  ;;  %v470_v23 = vpop.f32.mrb[2].mxu0  ;;  %v524_v24 = vsel %vm523_vm6, %v522_v19, -inf }
  0xfc   : > { %v616_v25 = vsel %vm612_vm7, %v609_v20, -inf  ;;  %525 = vmax.xlane.f32.xlu0 %v524_v24  ;;  %v1018_v27 = vpop.f32.mrb[3].mxu0  ;;  %v675_v23 = vld [vmem:[%s1418_s22] sm:$0xff] }
  0xfd   : > { %617 = vmax.xlane.f32.xlu1 %v616_v25 }
 0x100   : > { %614 = vmax.xlane.f32.xlu0 %v613_v28 }
 0x189   : > { %v526_v31 = vpop.xlane.xlu0 %525 }
 0x18a   : > { %v618_v32 = vpop.xlane.xlu1 %617  ;;  %v527_v38 = vsub.f32 %v522_v19, %v526_v31 }
 0x18b   : > { %v1400_v33 = vmax.f32 %v611_v30, %v618_v32 }
 0x18c   : > { %v528_v39 = vmul.f32 1.442695, %v527_v38 }
 0x18d   : > { %634 = vperm.xlu0 %1107, %v1400_v33   ;;  %v615_v35 = vpop.xlane.xlu0 %614  ;;  %v622_v58 = vsub.f32 %v611_v30, %v1400_v33 }
 0x18e   : > { %v1403_v36 = vmax.f32 %v610_v34, %v615_v35  ;;  %1111 = vpow2.f32 %v528_v39  ;;  %v763_v35 = vld [vmem:[%s1430_s12 + $0x8] sm:$0xff]  ;;  %s1246_s12 = smov [#allocation3]  }
 0x18f   : > { %v625_v60 = vmul.f32 1.442695, %v622_v58 }
 0x190   : > { %629 = vperm.xlu1 %1106, %v1403_v36   ;;  %v621_v57 = vsub.f32 %v610_v34, %v1403_v36 }
 0x192   : > { %v623_v59 = vmul.f32 1.442695, %v621_v57 }
 0x198   : > { %v1112_v40 = vpop.eup %1111 }
 0x199   : > { %v530_v41 = vsel %vm523_vm6, %v1112_v40, 0.0 }
 0x1b4   : > { %531 = vadd.xlane.f32.xlu1 %v530_v41 }
 0x1c5   : > { %645 = vrot.lane.b32.xlu1 %v610_v34, %s1243_s19 }
 0x20c   : > { %v635_v42 = vpop.permute.xlu0 %634 }
 0x20d   : > { %v638_v43 = vsub.f32 %v609_v20, %v635_v42 }
 0x20f   : > { %v641_v44 = vmul.f32 1.442695, %v638_v43  ;;  %v630_v45 = vpop.permute.xlu1 %629 }
 0x210   : > { %v637_v46 = vsub.f32 %v608_v26, %v630_v45  ;;  %v676_v26 = vld [vmem:[%s1418_s22 + $0x8] sm:$0xff] }
 0x211   : > { %1113 = vpow2.f32 %v641_v44 }
 0x212   : > { %v639_v47 = vmul.f32 1.442695, %v637_v46 }
 0x214   : > { %1115 = vpow2.f32 %v639_v47 }
 0x21b   : > { %v1114_v48 = vpop.eup %1113 }
 0x21c   : > { %v656_v49 = vsel %vm612_vm7, %v1114_v48, 0.0 }
 0x21d   : > { %657 = vadd.xlane.f32.xlu1 %v656_v49 }
 0x21e   : > { %v1116_v50 = vpop.eup %1115 }
 0x21f   : > { %v653_v51 = vsel %vm612_vm7, %v1116_v50, 0.0  ;;  %v689_v52 = vpack.c.bf16 %v1114_v48, %v1116_v50 }
 0x220   : > { %654 = vadd.xlane.f32.xlu0 %v653_v51 }
 0x221   : > { %1034 = vmatmul.mubr.msk.bf16.vlgmr.msra.gmra.mrb[4].mxu1 %vm612_vm7, %v689_v52 }
 0x22e   : > { %647 = vrot.lane.b32.xlu1 %v611_v30, %s1243_s19  ;;  %s411_s19 = scalar_lea.vmem %s1543_s4, %s1002_s17  ;;  %s376_s17 = scalar_lea.vmem [#allocation3], %s982_s15 }
 0x22f   : > { %v580_v0 = vld [vmem:[%s411_s19] sm:$0xff]  ;;  %s798_s23 = sshll.u32 %s376_s17, 4  ;;  %s1131_s19 = sshll.u32 %s1246_s12, 4  ;;  %s799_s23 = int_to_ptr.vmem [resolvable:$true] %s798_s23  ;;  %s1132_s19 = int_to_ptr.vmem [resolvable:$false] %s1131_s19 }
 0x230   : > { %s1127_s18 = scalar_lea.vmem %s799_s23, 128  ;;  %s1133_s15 = scalar_lea.vmem %s1132_s19, 256 }
 0x231   : > { %p1128_p12 = scmp.ne.s32.totalorder %s799_s23, %s1127_s18  ;;  %p1134_p1 = scmp.lt.s32.totalorder %s799_s23, %s1132_s19 }
 0x232   : > { %p1135_p2 = scmp.lt.s32.totalorder %s1133_s15, %s1127_s18 }
 0x233   : > { %p1129_p13 = pnand %p1128_p12, %p1330_p4 }
 0x234   : > { %p1136_p3 = por %p1135_p2, %p1134_p1 }
 0x235   : > { %p1130_p0 = pneg %p1129_p13 }
 0x237   : > { %p1137_p5 = pnand %p1136_p3, %p1130_p0 }
 0x241   : > { %v532_v53 = vpop.xlane.xlu1 %531 }
 0x242   : > { %1117 = vrcp.f32 %v532_v53 }
 0x243   : > { %1119 = vpow2.f32 %v623_v59 }
 0x244   : > { %1121 = vpow2.f32 %v625_v60 }
 0x245   : > { %v646_v61 = vpop.permute.xlu1 %645 }
 0x24c   : > { %v1118_v54 = vpop.eup %1117 }
 0x24d   : > { %v534_v55 = vmul.f32 %v1118_v54, %v1112_v40  ;;  %v1120_v63 = vpop.eup %1119 }
 0x24e   : > { %v651_v1 = vmul.f32 %v1120_v63, %v646_v61  ;;  %v1122_v2 = vpop.eup %1121 }
 0x24f   : > { %v535_v56 = vpack.c.bf16 %v534_v55, %v534_v55 }
 0x251   : > { %1028 = vmatmul.mubr.msk.bf16.vlgmr.msra.gmra.mrb[4].mxu0 %vm523_vm6, %v535_v56 }
 0x2aa   : > { %v658_v62 = vpop.xlane.xlu1 %657 }
 0x2ad   : > { %v655_v3 = vpop.xlane.xlu0 %654 }
 0x2ae   : > { %v648_v4 = vpop.permute.xlu1 %647  ;;  %v659_v6 = vadd.f32 %v655_v3, %v651_v1 }
 0x2af   : > { %v652_v7 = vmul.f32 %v1122_v2, %v648_v4 }
 0x2b0   : > { %663 = vrot.lane.b32.xlu1 %v659_v6, %s1244_s30 }
 0x2b1   : > { %v660_v8 = vadd.f32 %v658_v62, %v652_v7 }
 0x2b3   : > { %665 = vrot.lane.b32.xlu0 %v660_v8, %s1244_s30 }
 0x2b4   : > { %679 = vperm.xlu1 %1106, %v1120_v63  }
 0x2b7   : > { %766 = vperm.xlu0 %1107, %v762_v9  }
 0x2b8   : > { %684 = vperm.xlu1 %1106, %v1122_v2  }
 0x2bc   : > { %583 = vperm.xlu1 %1106, %v580_v0  }
 0x2c0   : > { %1108 = vset.pattern.permute.xlu1 %v1245_v10 }
 0x2f4   : > { %v730_v11 = vpop.f32.mrb[4].mxu1 }
 0x2f5   : > { %v1035_v12 = vpop.f32.mrb[5].mxu1 }
 0x2f6   : > { %v733_v13 = vpop.f32.mrb[6].mxu1 }
 0x2f7   : > { %v1036_v14 = vpop.f32.mrb[7].mxu1 }
 0x322   : > { %v664_v15 = vpop.permute.xlu1 %663 }
 0x323   : > { %670 = vst.msk [vmem:[#allocation2] sm:$0xff] %vm595_vm9, %v664_v15 }
 0x324   : > { %673 = vst.msk [vmem:[#allocation2] sm:$0xff] %vm592_vm8, %v1403_v36  ;;  %v574_v16 = vpop.f32.mrb[4].mxu0 }
 0x325   : > { %v666_v17 = vpop.permute.xlu0 %665  ;;  %v1029_v18 = vpop.f32.mrb[5].mxu0 }
 0x326   : > { %671 = vst.msk [vmem:[#allocation2 + $0x8] sm:$0xff] %vm595_vm9, %v666_v17  ;;  %v577_v19 = vpop.f32.mrb[6].mxu0 }
 0x327   : > { %674 = vst.msk [vmem:[#allocation2 + $0x8] sm:$0xff] %vm592_vm8, %v1400_v33  ;;  %v1030_v20 = vpop.f32.mrb[7].mxu0 }
 0x32b   : > { %v744_v21 = vld [vmem:[#allocation2] sm:$0xff] }
 0x32c   : > { %1123 = vrcp.f32 %v744_v21 }
 0x32e   : > { %v745_v22 = vld [vmem:[#allocation2 + $0x8] sm:$0xff] }
 0x32f   : > { %1125 = vrcp.f32 %v745_v22 }
 0x333   : > { %v680_v24 = vpop.permute.xlu1 %679 }
 0x334   : > { %v687_v25 = vmul.f32 %v680_v24, %v675_v23 }
 0x336   : > { %v1124_v27 = vpop.eup %1123  ;;  %v737_v28 = vadd.f32 %v730_v11, %v687_v25 }
 0x337   : > { %752 = vperm.xlu1 %1108, %v1124_v27   ;;  %v685_v29 = vpop.permute.xlu1 %684 }
 0x338   : > { %739 = vst.msk [vmem:[%s1418_s22] sm:$0xff] %vm426_vm1, %v737_v28  ;;  %v688_v31 = vmul.f32 %v685_v29, %v676_v26 }
 0x339   : > { %v1126_v30 = vpop.eup %1125 }
 0x33a   : > { %v738_v32 = vadd.f32 %v733_v13, %v688_v31 }
 0x33b   : > { %757 = vperm.xlu1 %1108, %v1126_v30   ;;  %v584_v33 = vpop.permute.xlu1 %583 }
 0x33c   : > { %740 = vst.msk [vmem:[%s1418_s22 + $0x8] sm:$0xff] %vm426_vm1, %v738_v32  ;;  %v586_v34 = vmul.f32 %v584_v33, %v574_v16 }
 0x33e   : > { %587 = vst.msk [vmem:[%s376_s17] sm:$0xff] %vm426_vm1, %v586_v34 }
 0x33f   : > { %1109 = vset.pattern.permute.xlu1 %v1241_v5 }
 0x340   : > { %771 = vperm.xlu1 %1109, %v763_v35  }
 0x341   : > { %1140 = shalt.err (!%p1137_p5)
}
 0x342   : > { %s1141_s17 = scalar_lea.hbm %s1458_s10, 128  ;;  %s1145_s8 = scalar_lea.hbm %s1545_s6, 256 }
 0x343   : > { %p1142_p6 = scmp.ne.s32.totalorder %s1458_s10, %s1141_s17  ;;  %p1146_p10 = scmp.lt.u32.totalorder %s1458_s10, %s1545_s6 }
 0x344   : > { %p1147_p11 = scmp.lt.u32.totalorder %s1145_s8, %s1141_s17  ;;  %p1149_p13 = scmp.lt.u32.totalorder %s1141_s17, %s1458_s10 }
 0x345   : > { %p1143_p7 = pnand %p1142_p6, %p1330_p4 }
 0x346   : > { %p1148_p12 = por %p1147_p11, %p1146_p10 }
 0x347   : > { %p1144_p9 = pneg %p1143_p7 }
 0x348   : > { %p1150_p0 = por %p1149_p13, %p1148_p12 }
 0x34a   : > { %p1151_p1 = pnand %p1150_p0, %p1144_p9 }
 0x34c   : > { %1154 = shalt.err (!%p1151_p1)
}
 0x34d   : > { %1037 = dma.vmem_to_hbm [thread:$0]  (%p1330_p4), %s799_s23, 128, %s1458_s10, %s779_s16   ;;  %v748_v36 = vld [vmem:[%s1418_s22] sm:$0xff]  ;;  %v767_v38 = vpop.permute.xlu0 %766  ;;  %v749_v41 = vld [vmem:[%s1418_s22 + $0x8] sm:$0xff] }
 0x34e   : > { %s1004_s18 = sshll.u32 %s1229_s27, 8  ;;  %s811_s15 = sshll.u32 %s1418_s22, 4  ;;  %s1489_s15 = int_to_ptr.vmem [resolvable:$true] %s811_s15 }
 0x34f   : > { %s1487_s23 = scalar_lea.hbm %s1546_s7, %s1004_s18  ;;  %s784_s10 = scalar_lea.sflag [#allocation6], %s1415_s20 }
 0x350   : > { %s1155_s16 = scalar_lea.vmem %s1489_s15, 256  ;;  %s1247_s27 = smov [#allocation5]  }
 0x351   : > { %p1156_p2 = scmp.ne.s32.totalorder %s1489_s15, %s1155_s16  ;;  %s1159_s30 = sshll.u32 %s1247_s27, 4  ;;  %s1160_s30 = int_to_ptr.vmem [resolvable:$false] %s1159_s30 }
 0x352   : > { %s1161_s8 = scalar_lea.vmem %s1160_s30, 512  ;;  %p1162_p6 = scmp.lt.s32.totalorder %s1489_s15, %s1160_s30 }
 0x353   : > { %p1157_p3 = pnand %p1156_p2, %p1330_p4  ;;  %p1163_p7 = scmp.lt.s32.totalorder %s1161_s8, %s1155_s16 }
 0x355   : > { %p1158_p5 = pneg %p1157_p3  ;;  %p1164_p9 = por %p1163_p7, %p1162_p6 }
 0x357   : > { %p1165_p10 = pnand %p1164_p9, %p1158_p5 }
 0x3b6   : > { %v753_v5 = vpop.permute.xlu1 %752 }
 0x3b7   : > { %v760_v37 = vmul.f32 %v753_v5, %v748_v36 }
 0x3b9   : > { %v774_v39 = vmul.f32 %v767_v38, %v760_v37 }
 0x3ba   : > { %v758_v40 = vpop.permute.xlu1 %757 }
 0x3bb   : > { %776 = vst.msk [vmem:[%s1418_s22] sm:$0xff] %vm426_vm1, %v774_v39  ;;  %v761_v42 = vmul.f32 %v758_v40, %v749_v41 }
 0x3bf   : > { %v772_v43 = vpop.permute.xlu1 %771 }
 0x3c0   : > { %v775_v44 = vmul.f32 %v772_v43, %v761_v42 }
 0x3c2   : > { %777 = vst.msk [vmem:[%s1418_s22 + $0x8] sm:$0xff] %vm426_vm1, %v775_v44 }
 0x3c3   : > { %1168 = shalt.err (!%p1165_p10)
}
 0x3c4   : > { %s1169_s22 = scalar_lea.hbm %s1487_s23, 256  ;;  %s1173_s18 = scalar_lea.hbm %s1546_s7, 512 }
 0x3c5   : > { %p1170_p11 = scmp.ne.s32.totalorder %s1487_s23, %s1169_s22  ;;  %p1174_p0 = scmp.lt.u32.totalorder %s1487_s23, %s1546_s7 }
 0x3c6   : > { %p1175_p1 = scmp.lt.u32.totalorder %s1173_s18, %s1169_s22  ;;  %p1177_p3 = scmp.lt.u32.totalorder %s1169_s22, %s1487_s23 }
 0x3c7   : > { %p1171_p12 = pnand %p1170_p11, %p1330_p4 }
 0x3c8   : > { %p1176_p2 = por %p1175_p1, %p1174_p0 }
 0x3c9   : > { %p1172_p13 = pneg %p1171_p12 }
 0x3ca   : > { %p1178_p5 = por %p1177_p3, %p1176_p2 }
 0x3cc   : > { %p1179_p6 = pnand %p1178_p5, %p1172_p13 }
 0x3ce   : > { %1182 = shalt.err (!%p1179_p6)
}
 0x3cf   : > { %s1248_s16 = smov 128   ;;  %s1249_s27 = smov 8  }
 0x3d0   : > { %1038 = dma.vmem_to_hbm [thread:$0]  (%p1330_p4), %s1489_s15, 256, %s1487_s23, %s784_s10, %s1248_s16, %s1248_s16, %s1249_s27  }
 0x3d1 PF: > { %p1048_p7 = scmp.ge.s32.totalorder %s1237_s29, 2  ;;  %s826_s30 = sand.u32 1, %s1217_s24  }
 0x3d2   : > { %s827_s8 = scalar_lea.sflag [#allocation4], %s826_s30 }
 0x3d3   : > { %p1042_p9 = pnand %p1048_p7, %p1337_p8 }
 0x3d5   : > { %1208 = dma.done.wait (!%p1042_p9), %s827_s8, 128  }
 0x3d6   : > { %1210 = vsyncadd (!%p1042_p9), %s827_s8, 4294967168  ;;  %s836_s22 = scalar_lea.sflag [#allocation6], %s826_s30 }
 0x3d7   : > { %1212 = dma.done.wait (!%p1042_p9), %s836_s22, 256  }
 0x3d8   : > { %1214 = vsyncadd (!%p1042_p9), %s836_s22, 4294967040  ;;  %s24_s29 = sadd.s32 1, %s1237_s29   ;;  %s1549_s24 = smov %s1221_s25 }
 0x3d9   : > { %p21_p10 = scmp.ge.s32.totalorder %s24_s29, 4   ;;  %s1550_s25 = smov %s1225_s26 }
 0x3da   : > { %s1551_s26 = smov %s1343_s14  ;;  %s1552_s27 = smov %s1233_s28 }
 0x3db   : > { %s1553_s28 = smov %s1555_s9  ;;  %23 = sbr.rel (!%p21_p10) target bundleno = 6 (0x6), region = 119 }
 0x3e2   :  { %841 = vsyncpa [#allocation4], 1 }
 0x3e3   :  { %843 = vsyncpa [#allocation4 + $0x1], 1 }
 0x3e4   :  { %844 = vsyncpa [#allocation6], 1 }
 0x3e5   :  { %846 = vsyncpa [#allocation6 + $0x1], 1 }

</bundles_post_ra>
